<compile_context>
chip_gen: v7x
topology: tpu7x:2x2x1
jax: 0.10.0
libtpu: 0.0.40
codegen_flags: <defaults>
</compile_context>

<pallas_src>
import functools

import jax
import jax.numpy as jnp
from jax import lax
from jax.experimental import pallas as pl
from jax.experimental.pallas import tpu as pltpu

GAMMA = 2.0
ALPHA = 0.25
LANES = 128
SUBLANES = 8
MAX_BLOCK_ROWS = 1024  # 1024*128*4B = 512 KiB per input tile; 2 inputs x 2 bufs = 2 MiB VMEM


def _focal_kernel(x_ref, t_ref, o_ref, *, gamma, alpha, n, block_rows,
                  blocks_per_core, needs_mask):
    c = pl.program_id(0)   # core-parallel axis
    i = pl.program_id(1)   # reduction (streaming) axis

    @pl.when(i == 0)
    def _():
        o_ref[...] = jnp.zeros_like(o_ref)

    x = x_ref[...].astype(jnp.float32)
    t = t_ref[...].astype(jnp.float32)

    # Numerically stable BCE-with-logits (== F.binary_cross_entropy_with_logits):
    #   bce = max(x, 0) - x * t + log1p(exp(-|x|))
    bce = jnp.maximum(x, 0.0) - x * t + jnp.log1p(jnp.exp(-jnp.abs(x)))
    pt = jnp.exp(-bce)
    one_minus_pt = 1.0 - pt
    if gamma == 2.0:
        mod = one_minus_pt * one_minus_pt          # avoid generic pow (log+exp on EUP)
    elif gamma == 1.0:
        mod = one_minus_pt
    else:
        mod = one_minus_pt ** gamma
    focal = alpha * mod * bce

    if needs_mask:
        # Only padded tail elements must be zeroed; mask is a few cheap VPU ops.
        base = (c * blocks_per_core + i) * (block_rows * LANES)
        ridx = lax.broadcasted_iota(jnp.int32, (block_rows, LANES), 0)
        lidx = lax.broadcasted_iota(jnp.int32, (block_rows, LANES), 1)
        idx = base + ridx * LANES + lidx
        focal = jnp.where(idx < n, focal, 0.0)

    # Fold (block_rows, 128) -> (8, 128) partial sums with vreg-wise adds
    # (no per-step cross-lane XLU reduce, no serial scalar dependency).
    o_ref[...] += jnp.sum(focal.reshape(block_rows // SUBLANES, SUBLANES, LANES), axis=0)


def binary_focal_loss(logits, targets, gamma=GAMMA, alpha=ALPHA):
    """Mean binary focal loss over all elements (use_logits=True)."""
    assert logits.shape == targets.shape
    n = logits.size

    rows = pl.cdiv(n, LANES)
    rows_aligned = pl.cdiv(rows, SUBLANES) * SUBLANES
    block_rows = min(MAX_BLOCK_ROWS, rows_aligned)
    num_blocks = pl.cdiv(rows_aligned, block_rows)

    # 2-way core split when there is enough work (uses both TCs on v7x;
    # runs as two sequential chunks elsewhere, with its own partial output each).
    num_cores = 2 if num_blocks >= 2 else 1
    blocks_per_core = pl.cdiv(num_blocks, num_cores)
    total_rows = num_cores * blocks_per_core * block_rows
    padded_n = total_rows * LANES
    needs_mask = padded_n != n

    # Keep inputs in their HBM dtype; cast to f32 inside the kernel.
    x = logits.reshape(-1)
    t = targets.reshape(-1)
    if needs_mask:
        # Single tail pad per stream (only when n is not block-aligned).
        x = jnp.pad(x, (0, padded_n - n))
        t = jnp.pad(t, (0, padded_n - n))
    x2 = x.reshape(total_rows, LANES)
    t2 = t.reshape(total_rows, LANES)

    kernel = functools.partial(
        _focal_kernel, gamma=float(gamma), alpha=float(alpha), n=n,
        block_rows=block_rows, blocks_per_core=blocks_per_core,
        needs_mask=needs_mask)

    in_blk = pl.BlockSpec((block_rows, LANES),
                          lambda c, i: (c * blocks_per_core + i, 0))
    out = pl.pallas_call(
        kernel,
        out_shape=jax.ShapeDtypeStruct((num_cores * SUBLANES, LANES), jnp.float32),
        grid_spec=pltpu.PrefetchScalarGridSpec(
            num_scalar_prefetch=0,
            grid=(num_cores, blocks_per_core),
            in_specs=[in_blk, in_blk],
            # Per-core (8,128) partial-sum tile, resident across the reduction axis.
            out_specs=pl.BlockSpec((SUBLANES, LANES), lambda c, i: (c, 0)),
        ),
        compiler_params=pltpu.CompilerParams(
            dimension_semantics=("parallel", "arbitrary")),
    )(x2, t2)

    # Final cross-lane reduce + mean on a tiny (num_cores*8, 128) array.
    return jnp.sum(out) / n


def _reference(logits, targets, gamma=GAMMA, alpha=ALPHA):
    x = logits.astype(jnp.float32)
    t = targets.astype(jnp.float32)
    bce = jnp.maximum(x, 0.0) - x * t + jnp.log1p(jnp.exp(-jnp.abs(x)))
    pt = jnp.exp(-bce)
    return jnp.mean(alpha * (1.0 - pt) ** gamma * bce)


if __name__ == "__main__":
    key = jax.random.PRNGKey(0)
    k1, k2, k3, k4 = jax.random.split(key, 4)

    # Segmentation-style usage: (N, C, H, W), lane-aligned case (no pad, no mask).
    logits = jax.random.normal(k1, (2, 4, 16, 16), dtype=jnp.float32)
    targets = (jax.random.uniform(k2, (2, 4, 16, 16)) > 0.5).astype(jnp.float32)
    loss = binary_focal_loss(logits, targets)
    jax.block_until_ready(loss)
    ref = _reference(logits, targets)
    assert jnp.allclose(loss, ref, rtol=1e-5, atol=1e-6), (loss, ref)

    # Ragged case exercising the in-kernel tail mask / padding path.
    logits2 = jax.random.normal(k3, (2, 3, 7, 5), dtype=jnp.float32)
    targets2 = (jax.random.uniform(k4, (2, 3, 7, 5)) > 0.5).astype(jnp.float32)
    loss2 = binary_focal_loss(logits2, targets2)
    jax.block_until_ready(loss2)
    ref2 = _reference(logits2, targets2)
    assert jnp.allclose(loss2, ref2, rtol=1e-5, atol=1e-6), (loss2, ref2)

    print("KERNEL_OK")
</pallas_src>

<mosaic_0001>
module attributes {stable_mosaic.version = 11 : i64} {
  func.func @_focal_kernel(%arg0: i32, %arg1: i32, %arg2: memref<16x128xf32, #tpu.memory_space<vmem>>, %arg3: memref<16x128xf32, #tpu.memory_space<vmem>>, %arg4: memref<8x128xf32, #tpu.memory_space<vmem>>) attributes {dimension_semantics = [#tpu.dimension_semantics<parallel>, #tpu.dimension_semantics<arbitrary>], iteration_bounds = array<i64: 1, 1>, scalar_prefetch = 0 : i64, scratch_operands = 0 : i64, tpu.core_type = #tpu.core_type<tc>, window_params = [{transform_indices = @transform_0, window_bounds = array<i64: 16, 128>}, {transform_indices = @transform_1, window_bounds = array<i64: 16, 128>}, {transform_indices = @transform_2, window_bounds = array<i64: 8, 128>}]} {
    %c0_i32 = arith.constant 0 : i32
    %0 = arith.cmpi eq, %arg1, %c0_i32 : i32
    %1 = arith.extui %0 : i1 to i32
    %c0_i32_0 = arith.constant 0 : i32
    %2 = arith.cmpi ne, %1, %c0_i32_0 : i32
    scf.if %2 {
      %cst_13 = arith.constant 0.000000e+00 : f32
      %29 = vector.broadcast %cst_13 : f32 to vector<8x128xf32>
      %c0_14 = arith.constant 0 : index
      %c0_15 = arith.constant 0 : index
      %30 = vector.load %arg4[%c0_14, %c0_15] : memref<8x128xf32, #tpu.memory_space<vmem>>, vector<8x128xf32>
      tpu.vector_store %arg4[%c0_14, %c0_15], %29 {strides = array<i32>} : memref<8x128xf32, #tpu.memory_space<vmem>>, vector<8x128xf32>,
    } else {
    }
    %c0 = arith.constant 0 : index
    %c0_1 = arith.constant 0 : index
    %3 = vector.load %arg2[%c0, %c0_1] : memref<16x128xf32, #tpu.memory_space<vmem>>, vector<16x128xf32>
    %c0_2 = arith.constant 0 : index
    %c0_3 = arith.constant 0 : index
    %4 = vector.load %arg3[%c0_2, %c0_3] : memref<16x128xf32, #tpu.memory_space<vmem>>, vector<16x128xf32>
    %cst = arith.constant 0.000000e+00 : f32
    %5 = vector.broadcast %cst : f32 to vector<16x128xf32>
    %6 = arith.maximumf %3, %5 : vector<16x128xf32>
    %7 = arith.mulf %3, %4 : vector<16x128xf32>
    %8 = arith.subf %6, %7 : vector<16x128xf32>
    %9 = math.absf %3 : vector<16x128xf32>
    %cst_4 = arith.constant 0.000000e+00 : f32
    %10 = vector.broadcast %cst_4 : f32 to vector<16x128xf32>
    %11 = arith.subf %10, %9 : vector<16x128xf32>
    %12 = math.exp %11 : vector<16x128xf32>
    %13 = math.log1p %12 : vector<16x128xf32>
    %14 = arith.addf %8, %13 : vector<16x128xf32>
    %cst_5 = arith.constant 0.000000e+00 : f32
    %15 = vector.broadcast %cst_5 : f32 to vector<16x128xf32>
    %16 = arith.subf %15, %14 : vector<16x128xf32>
    %17 = math.exp %16 : vector<16x128xf32>
    %cst_6 = arith.constant 1.000000e+00 : f32
    %18 = vector.broadcast %cst_6 : f32 to vector<16x128xf32>
    %19 = arith.subf %18, %17 : vector<16x128xf32>
    %20 = arith.mulf %19, %19 : vector<16x128xf32>
    %cst_7 = arith.constant 2.500000e-01 : f32
    %21 = vector.broadcast %cst_7 : f32 to vector<16x128xf32>
    %22 = arith.mulf %21, %20 : vector<16x128xf32>
    %23 = arith.mulf %22, %14 : vector<16x128xf32>
    %c0_8 = arith.constant 0 : index
    %c0_9 = arith.constant 0 : index
    %24 = vector.load %arg4[%c0_8, %c0_9] : memref<8x128xf32, #tpu.memory_space<vmem>>, vector<8x128xf32>
    %25 = vector.shape_cast %23 : vector<16x128xf32> to vector<2x8x128xf32>
    %cst_10 = arith.constant dense<0.000000e+00> : vector<8x128xf32>
    %26 = vector.multi_reduction <add>, %25, %cst_10 [0] : vector<2x8x128xf32> to vector<8x128xf32>
    %27 = arith.addf %24, %26 : vector<8x128xf32>
    %c0_11 = arith.constant 0 : index
    %c0_12 = arith.constant 0 : index
    %28 = vector.load %arg4[%c0_11, %c0_12] : memref<8x128xf32, #tpu.memory_space<vmem>>, vector<8x128xf32>
    tpu.vector_store %arg4[%c0_11, %c0_12], %27 {strides = array<i32>} : memref<8x128xf32, #tpu.memory_space<vmem>>, vector<8x128xf32>,
    return
  }
  func.func @transform_0(%arg0: i32, %arg1: i32) -> (i32, i32) {
    %c1_i32 = arith.constant 1 : i32
    %0 = arith.muli %arg0, %c1_i32 : i32
    %1 = arith.addi %0, %arg1 : i32
    %c0_i32 = arith.constant 0 : i32
    %c0_i32_0 = arith.constant 0 : i32
    return %1, %c0_i32 : i32, i32
  }
  func.func @transform_1(%arg0: i32, %arg1: i32) -> (i32, i32) {
    %c1_i32 = arith.constant 1 : i32
    %0 = arith.muli %arg0, %c1_i32 : i32
    %1 = arith.addi %0, %arg1 : i32
    %c0_i32 = arith.constant 0 : i32
    %c0_i32_0 = arith.constant 0 : i32
    return %1, %c0_i32 : i32, i32
  }
  func.func @transform_2(%arg0: i32, %arg1: i32) -> (i32, i32) {
    %c0_i32 = arith.constant 0 : i32
    %c0_i32_0 = arith.constant 0 : i32
    return %arg0, %c0_i32 : i32, i32
  }
}

</mosaic_0001>

<bundles_post_ra>
// kernel: tpu_custom_call.1
= control target key start
LH: loop header
LB: loop body
LE: loop exit
PB: predicated region body
PF: predicated region fallthrough
CT: control target
= control target key end

     0   :  { %7 = vsyncpa [#allocation3], 0  ;;  %s275_s0 = inlined_call_operand.hbm [shape: f32[16,128], index: 0, kind: input, shape index: {}]   ;;  %s276_s1 = inlined_call_operand.hbm [shape: f32[16,128], index: 1, kind: input, shape index: {}]   ;;  %s277_s2 = inlined_call_operand.hbm [shape: f32[8,128], index: 2, kind: output, shape index: {}]  }
   0x1   :  { %8 = vsyncpa [#allocation6], 0 }
   0x2   :  { %9 = vsyncpa [#allocation4], 0  ;;  %s219_s9 = smov [#allocation2]   ;;  %s147_s13 = scalar_lea.hbm %s275_s0, 256 }
   0x3   :  { %s19_s10 = sshll.u32 %s219_s9, 4  ;;  %p148_p0 = scmp.ne.s32.totalorder %s275_s0, %s147_s13  ;;  %s20_s10 = int_to_ptr.vmem [resolvable:$true] %s19_s10 }
   0x4   :  { %p151_p1 = scmp.lt.u32.totalorder %s147_s13, %s275_s0 }
   0x6   :  { %p153_p2 = pnand %p151_p1, %p148_p0 }
   0x8   :  { %156 = shalt.err (!%p153_p2)
}
   0x9   :  { %s157_s18 = scalar_lea.vmem %s20_s10, 256  ;;  %p162_p4 = scmp.lt.s32.totalorder %s20_s10, %s20_s10 }
   0xa   :  { %p158_p3 = scmp.ne.s32.totalorder %s20_s10, %s157_s18  ;;  %p163_p5 = scmp.lt.s32.totalorder %s157_s18, %s157_s18 }
   0xc   :  { %p164_p6 = por %p163_p5, %p162_p4 }
   0xe   :  { %p165_p7 = pnand %p164_p6, %p158_p3 }
  0x10   :  { %168 = shalt.err (!%p165_p7)
}
  0x11   :  { %s220_s19 = smov 128   ;;  %s221_s20 = smov 8  }
  0x12   :  { %25 = dma.hbm_to_vmem [thread:$0]  %s275_s0, 256, %s20_s10, [#allocation3], %s220_s19, %s220_s19, %s221_s20  }
  0x13   :  { %s222_s23 = smov [#allocation5]   ;;  %s169_s27 = scalar_lea.hbm %s276_s1, 256 }
  0x14   :  { %s35_s24 = sshll.u32 %s222_s23, 4  ;;  %p170_p8 = scmp.ne.s32.totalorder %s276_s1, %s169_s27  ;;  %s36_s24 = int_to_ptr.vmem [resolvable:$true] %s35_s24 }
  0x15   :  { %p173_p9 = scmp.lt.u32.totalorder %s169_s27, %s276_s1 }
  0x17   :  { %p175_p10 = pnand %p173_p9, %p170_p8 }
  0x19   :  { %178 = shalt.err (!%p175_p10)
}
  0x1a   :  { %s179_s4 = scalar_lea.vmem %s36_s24, 256  ;;  %p184_p12 = scmp.lt.s32.totalorder %s36_s24, %s36_s24 }
  0x1b   :  { %p180_p11 = scmp.ne.s32.totalorder %s36_s24, %s179_s4  ;;  %p185_p13 = scmp.lt.s32.totalorder %s179_s4, %s179_s4 }
  0x1d   :  { %p186_p0 = por %p185_p13, %p184_p12 }
  0x1f   :  { %p187_p1 = pnand %p186_p0, %p180_p11 }
  0x21   :  { %190 = shalt.err (!%p187_p1)
}
  0x22   :  { %41 = dma.hbm_to_vmem [thread:$0]  %s276_s1, 256, %s36_s24, [#allocation6], %s220_s19, %s220_s19, %s221_s20  }
  0x23   :  { %213 = dma.done.wait [#allocation3], 256  }
  0x24   :  { %214 = vsyncadd [#allocation3], 4294967040 }
  0x25   :  { %215 = dma.done.wait [#allocation6], 256  }
  0x26   :  { %216 = vsyncadd [#allocation6], 4294967040  ;;  %v57_v0 = vld [vmem:[#allocation2] sm:$0xff]  ;;  %v58_v1 = vld [vmem:[#allocation2 + $0x8] sm:$0xff]  ;;  %s223_s1 = smov [#allocation7]  }
  0x27   :  { %v67_v2 = vand.u32 2147483647, %v57_v0  ;;  %v68_v3 = vand.u32 2147483647, %v58_v1  ;;  %v59_v14 = vld [vmem:[#allocation5] sm:$0xff]  ;;  %v60_v15 = vld [vmem:[#allocation5 + $0x8] sm:$0xff] }
  0x28   :  { %v61_v17 = vmax.f32 %v57_v0, 0.0  ;;  %v63_v18 = vmul.f32 %v59_v14, %v57_v0  ;;  %v62_v21 = vmax.f32 %v58_v1, 0.0  ;;  %v64_v22 = vmul.f32 %v60_v15, %v58_v1  ;;  %s119_s6 = sshll.u32 %s223_s1, 4  ;;  %s120_s6 = int_to_ptr.vmem [resolvable:$true] %s119_s6 }
  0x29   :  { %v69_v4 = vsub.f32 0.0, %v67_v2  ;;  %v70_v5 = vsub.f32 0.0, %v68_v3  ;;  %s191_s7 = scalar_lea.vmem %s120_s6, 128  ;;  %p196_p3 = scmp.lt.s32.totalorder %s120_s6, %s120_s6 }
  0x2a   :  { %v65_v26 = vsub.f32 %v61_v17, %v63_v18  ;;  %v66_v29 = vsub.f32 %v62_v21, %v64_v22  ;;  %p192_p2 = scmp.ne.s32.totalorder %s120_s6, %s191_s7  ;;  %p197_p4 = scmp.lt.s32.totalorder %s191_s7, %s191_s7 }
  0x2b   :  { %v71_v6 = vmul.f32 1.442695, %v69_v4  ;;  %v73_v7 = vmul.f32 1.442695, %v70_v5 }
  0x2c   :  { %p198_p5 = por %p197_p4, %p196_p3 }
  0x2d   :  { %135 = vpow2.f32 %v71_v6 }
  0x2e   :  { %137 = vpow2.f32 %v73_v7  ;;  %p199_p6 = pnand %p198_p5, %p192_p2 }
  0x37   :  { %v136_v8 = vpop.eup %135 }
  0x38   :  { %v138_v9 = vpop.eup %137  ;;  %v75_v10 = vadd.f32 1.0, %v136_v8  ;;  %v78_v12 = vmul.f32 -0.5, %v136_v8  ;;  %v81_v19 = vand.u32 2147483647, %v136_v8 }
  0x39   :  { %v84_v11 = vadd.f32 1.0, %v138_v9  ;;  %v87_v13 = vmul.f32 -0.5, %v138_v9  ;;  %v90_v23 = vand.u32 2147483647, %v138_v9 }
  0x3a   :  { %139 = vlog2.f32 %v75_v10  ;;  %v79_v16 = vadd.f32 1.0, %v78_v12  ;;  %vm82_vm0 = vcmp.lt.f32.partialorder %v81_v19, 0.0004427343 }
  0x3b   :  { %141 = vlog2.f32 %v84_v11  ;;  %v88_v20 = vadd.f32 1.0, %v87_v13  ;;  %vm91_vm1 = vcmp.lt.f32.partialorder %v90_v23, 0.0004427343 }
  0x3c   :  { %v80_v24 = vmul.f32 %v136_v8, %v79_v16 }
  0x3d   :  { %v89_v27 = vmul.f32 %v138_v9, %v88_v20 }
  0x44   :  { %v140_v25 = vpop.eup %139 }
  0x45   :  { %v142_v28 = vpop.eup %141  ;;  %v77_v30 = vmul.f32 0.6931472, %v140_v25 }
  0x46   :  { %v86_v31 = vmul.f32 0.6931472, %v142_v28 }
  0x47   :  { %v83_v32 = vsel %vm82_vm0, %v80_v24, %v77_v30 }
  0x48   :  { %v92_v33 = vsel %vm91_vm1, %v89_v27, %v86_v31  ;;  %v93_v34 = vadd.f32 %v83_v32, %v65_v26 }
  0x49   :  { %v94_v35 = vadd.f32 %v92_v33, %v66_v29 }
  0x4a   :  { %v95_v36 = vsub.f32 0.0, %v93_v34 }
  0x4b   :  { %v96_v37 = vsub.f32 0.0, %v94_v35 }
  0x4c   :  { %v97_v38 = vmul.f32 1.442695, %v95_v36 }
  0x4d   :  { %v99_v39 = vmul.f32 1.442695, %v96_v37 }
  0x4e   :  { %143 = vpow2.f32 %v97_v38 }
  0x4f   :  { %145 = vpow2.f32 %v99_v39 }
  0x58   :  { %v144_v40 = vpop.eup %143 }
  0x59   :  { %v146_v41 = vpop.eup %145  ;;  %v101_v42 = vsub.f32 1.0, %v144_v40 }
  0x5a   :  { %v102_v43 = vsub.f32 1.0, %v146_v41 }
  0x5b   :  { %v103_v44 = vmul.f32 %v101_v42, %v101_v42 }
  0x5c   :  { %v104_v45 = vmul.f32 %v102_v43, %v102_v43 }
  0x5d   :  { %v105_v46 = vmul.f32 0.25, %v103_v44 }
  0x5e   :  { %v106_v47 = vmul.f32 0.25, %v104_v45 }
  0x5f   :  { %v107_v48 = vmul.f32 %v105_v46, %v93_v34 }
  0x60   :  { %v108_v49 = vmul.f32 %v106_v47, %v94_v35 }
  0x62   :  { %v110_v50 = vadd.f32 %v108_v49, %v107_v48 }
  0x64   :  { %112 = vst [vmem:[#allocation7] sm:$0xff] %v110_v50 }
  0x65   :  { %202 = shalt.err (!%p199_p6)
}
  0x66   :  { %s203_s10 = scalar_lea.hbm %s277_s2, 128 }
  0x67   :  { %p204_p7 = scmp.ne.s32.totalorder %s277_s2, %s203_s10  ;;  %p207_p8 = scmp.lt.u32.totalorder %s203_s10, %s277_s2 }
  0x69   :  { %p209_p9 = pnand %p207_p8, %p204_p7 }
  0x6b   :  { %212 = shalt.err (!%p209_p9)
}
  0x6c   :  { %122 = dma.vmem_to_hbm [thread:$0]  %s120_s6, 128, %s277_s2, [#allocation4]  }
  0x6d   :  { %217 = dma.done.wait [#allocation4], 128  }
  0x6e   :  { %218 = vsyncadd [#allocation4], 4294967168 }
  0x6f   :  { %126 = vsyncpa [#allocation3], 1 }
  0x70   :  { %127 = vsyncpa [#allocation6], 1 }
  0x71   :  { %128 = vsyncpa [#allocation4], 1 }

</bundles_post_ra>
